<compile_context>
chip_gen: v5e
topology: v5e:2x2
jax: 0.10.0
libtpu: 0.0.40
codegen_flags: <defaults>
</compile_context>

<pallas_src>
import jax
import jax.numpy as jnp
from jax.experimental import pallas as pl
from jax.experimental.pallas import tpu as pltpu


def _outconv_kernel(x_ref, w_ref, b_ref, o_ref):
    # x_ref: (1, Cin, THp, 2*W) VMEM -- lanes [0:W] = even row, [W:2W] = odd row
    # w_ref: (Cout, Cin) SMEM       b_ref: (Cout,) SMEM
    # o_ref: (1, Cout, THp, Wp) VMEM
    cin = x_ref.shape[1]
    cout = o_ref.shape[1]
    wp = o_ref.shape[3]
    w_full = x_ref.shape[3] // 2          # original image width W

    # Load the two row-parity slabs once (reused for every output channel).
    x_row_a = [x_ref[0, ci, :, :w_full].astype(jnp.float32) for ci in range(cin)]
    x_row_b = [x_ref[0, ci, :, w_full:].astype(jnp.float32) for ci in range(cin)]

    # 0/1 column-selection matrices (hoisted out of the channel loop).
    # Each column has exactly one 1, so the per-channel bias passes through
    # the selection matmul exactly.
    rid = jax.lax.broadcasted_iota(jnp.int32, (w_full, wp), 0)
    cid = jax.lax.broadcasted_iota(jnp.int32, (w_full, wp), 1)
    sel_even = (rid == 2 * cid).astype(jnp.float32)        # (W, Wp)
    sel_odd = (rid == 2 * cid + 1).astype(jnp.float32)     # (W, Wp)

    # Tiny Cout/Cin: fully unrolled VPU FMA loop (MXU skipped for the conv).
    for co in range(cout):
        wv = w_ref[co, 0]
        ya = x_row_a[0] * wv                               # conv of even rows
        yb = x_row_b[0] * wv                               # conv of odd rows
        for ci in range(1, cin):
            wv = w_ref[co, ci]
            ya = ya + x_row_a[ci] * wv
            yb = yb + x_row_b[ci] * wv
        # Vertical half of the 2x2 max-pool; per-channel bias commutes w/ max.
        yr = jnp.maximum(ya, yb) + b_ref[co]               # (THp, W)
        # Horizontal half: gather even/odd columns via MXU, max, then ReLU.
        pe = jnp.dot(yr, sel_even, preferred_element_type=jnp.float32)
        po = jnp.dot(yr, sel_odd, preferred_element_type=jnp.float32)
        o_ref[0, co] = jnp.maximum(jnp.maximum(pe, po), 0.0).astype(o_ref.dtype)


def _choose_row_tile(hp, bytes_per_pooled_row, target_bytes=2 * 1024 * 1024):
    """Largest multiple-of-8 divisor of hp whose x block stays under budget.

    Falls back to the full extent (allowed by BlockSpec rules) when no such
    divisor exists (hp < 8 or hp not a multiple of 8).
    """
    limit = max(1, target_bytes // max(1, bytes_per_pooled_row))
    best = None
    d = 8
    while d <= min(hp, limit):
        if hp % d == 0:
            best = d
        d += 8
    return best if best is not None else hp


def out_conv(x_nchw, weight, bias):
    """x_nchw: (N, Cin, H, W); weight: (Cout, Cin, 1, 1); bias: (Cout,)."""
    N, Cin, H, W = x_nchw.shape
    Cout = weight.shape[0]
    # nn.MaxPool2d(2) floor behaviour drops the last row/col for odd sizes;
    # that edge case is not implemented here.
    assert H % 2 == 0 and W % 2 == 0, "even H and W required (MaxPool2d(2))"
    Hp, Wp = H // 2, W // 2

    # Free view of NCHW: pooled row t holds [row 2t | row 2t+1] on lanes.
    x_view = x_nchw.reshape(N, Cin, Hp, 2 * W)
    w2 = weight[:, :, 0, 0].astype(jnp.float32)   # (Cout, Cin) -> SMEM scalars
    b2 = bias.astype(jnp.float32)                 # (Cout,)     -> SMEM scalars

    bytes_per_pooled_row = Cin * 2 * W * x_nchw.dtype.itemsize
    thp = _choose_row_tile(Hp, bytes_per_pooled_row)
    grid = (N, Hp // thp)

    return pl.pallas_call(
        _outconv_kernel,
        out_shape=jax.ShapeDtypeStruct((N, Cout, Hp, Wp), x_nchw.dtype),
        grid=grid,
        in_specs=[
            pl.BlockSpec((1, Cin, thp, 2 * W), lambda n, t: (n, 0, t, 0)),
            pl.BlockSpec(memory_space=pltpu.MemorySpace.SMEM),
            pl.BlockSpec(memory_space=pltpu.MemorySpace.SMEM),
        ],
        out_specs=pl.BlockSpec((1, Cout, thp, Wp), lambda n, t: (n, 0, t, 0)),
        compiler_params=pltpu.CompilerParams(
            dimension_semantics=("parallel", "parallel"),
            vmem_limit_bytes=32 * 1024 * 1024,
        ),
    )(x_view, w2, b2)


def out_conv_reference(x_nchw, weight, bias):
    """Pure-JAX reference: conv1x1 + bias -> maxpool2x2 -> relu (NCHW)."""
    y = jnp.einsum("nchw,oc->nohw", x_nchw, weight[:, :, 0, 0])
    y = y + bias[None, :, None, None]
    N, Co, H, W = y.shape
    y = y.reshape(N, Co, H // 2, 2, W // 2, 2).max(axis=(3, 5))
    return jnp.maximum(y, 0.0)


if __name__ == "__main__":
    key = jax.random.PRNGKey(0)
    k_x, k_w, k_b = jax.random.split(key, 3)

    N, Cin, H, W = 2, 4, 16, 16
    Cout = 8

    x = jax.random.normal(k_x, (N, Cin, H, W), dtype=jnp.float32)
    # Deterministic synthetic parameters (Conv2d(in=4, out=8, kernel_size=1)).
    weight = 0.1 * jax.random.normal(k_w, (Cout, Cin, 1, 1), dtype=jnp.float32)
    bias = 0.1 * jax.random.normal(k_b, (Cout,), dtype=jnp.float32)

    out = out_conv(x, weight, bias)
    out = jax.block_until_ready(out)

    ref = out_conv_reference(x, weight, bias)
    assert out.shape == (N, Cout, H // 2, W // 2), out.shape
    assert jnp.allclose(out, ref, atol=1e-5, rtol=1e-5), "mismatch vs reference"

    print("KERNEL_OK")
</pallas_src>

<mosaic_0001>
module attributes {stable_mosaic.version = 11 : i64} {
  func.func @_outconv_kernel(%arg0: i32, %arg1: i32, %arg2: memref<1x4x8x32xf32, #tpu.memory_space<vmem>>, %arg3: memref<8x4xf32, #tpu.memory_space<smem>>, %arg4: memref<8xf32, #tpu.memory_space<smem>>, %arg5: memref<1x8x8x8xf32, #tpu.memory_space<vmem>>) attributes {dimension_semantics = [#tpu.dimension_semantics<parallel>, #tpu.dimension_semantics<parallel>], iteration_bounds = array<i64: 2, 1>, scalar_prefetch = 0 : i64, scratch_operands = 0 : i64, tpu.core_type = #tpu.core_type<tc>, window_params = [{transform_indices = @transform_0, window_bounds = array<i64: 1, 4, 8, 32>}, {transform_indices = @transform_1, window_bounds = array<i64: 8, 4>}, {transform_indices = @transform_2, window_bounds = array<i64: 8>}, {transform_indices = @transform_3, window_bounds = array<i64: 1, 8, 8, 8>}]} {
    %c0 = arith.constant 0 : index
    %c0_0 = arith.constant 0 : index
    %c0_1 = arith.constant 0 : index
    %c0_2 = arith.constant 0 : index
    %0 = vector.load %arg2[%c0, %c0_0, %c0_1, %c0_2] : memref<1x4x8x32xf32, #tpu.memory_space<vmem>>, vector<1x1x8x16xf32>
    %1 = vector.shape_cast %0 : vector<1x1x8x16xf32> to vector<8x16xf32>
    %c0_3 = arith.constant 0 : index
    %c1 = arith.constant 1 : index
    %c0_4 = arith.constant 0 : index
    %c0_5 = arith.constant 0 : index
    %2 = vector.load %arg2[%c0_3, %c1, %c0_4, %c0_5] : memref<1x4x8x32xf32, #tpu.memory_space<vmem>>, vector<1x1x8x16xf32>
    %3 = vector.shape_cast %2 : vector<1x1x8x16xf32> to vector<8x16xf32>
    %c0_6 = arith.constant 0 : index
    %c2 = arith.constant 2 : index
    %c0_7 = arith.constant 0 : index
    %c0_8 = arith.constant 0 : index
    %4 = vector.load %arg2[%c0_6, %c2, %c0_7, %c0_8] : memref<1x4x8x32xf32, #tpu.memory_space<vmem>>, vector<1x1x8x16xf32>
    %5 = vector.shape_cast %4 : vector<1x1x8x16xf32> to vector<8x16xf32>
    %c0_9 = arith.constant 0 : index
    %c3 = arith.constant 3 : index
    %c0_10 = arith.constant 0 : index
    %c0_11 = arith.constant 0 : index
    %6 = vector.load %arg2[%c0_9, %c3, %c0_10, %c0_11] : memref<1x4x8x32xf32, #tpu.memory_space<vmem>>, vector<1x1x8x16xf32>
    %7 = vector.shape_cast %6 : vector<1x1x8x16xf32> to vector<8x16xf32>
    %c0_12 = arith.constant 0 : index
    %c0_13 = arith.constant 0 : index
    %c0_14 = arith.constant 0 : index
    %c16 = arith.constant 16 : index
    %8 = vector.load %arg2[%c0_12, %c0_13, %c0_14, %c16] : memref<1x4x8x32xf32, #tpu.memory_space<vmem>>, vector<1x1x8x16xf32>
    %9 = vector.shape_cast %8 : vector<1x1x8x16xf32> to vector<8x16xf32>
    %c0_15 = arith.constant 0 : index
    %c1_16 = arith.constant 1 : index
    %c0_17 = arith.constant 0 : index
    %c16_18 = arith.constant 16 : index
    %10 = vector.load %arg2[%c0_15, %c1_16, %c0_17, %c16_18] : memref<1x4x8x32xf32, #tpu.memory_space<vmem>>, vector<1x1x8x16xf32>
    %11 = vector.shape_cast %10 : vector<1x1x8x16xf32> to vector<8x16xf32>
    %c0_19 = arith.constant 0 : index
    %c2_20 = arith.constant 2 : index
    %c0_21 = arith.constant 0 : index
    %c16_22 = arith.constant 16 : index
    %12 = vector.load %arg2[%c0_19, %c2_20, %c0_21, %c16_22] : memref<1x4x8x32xf32, #tpu.memory_space<vmem>>, vector<1x1x8x16xf32>
    %13 = vector.shape_cast %12 : vector<1x1x8x16xf32> to vector<8x16xf32>
    %c0_23 = arith.constant 0 : index
    %c3_24 = arith.constant 3 : index
    %c0_25 = arith.constant 0 : index
    %c16_26 = arith.constant 16 : index
    %14 = vector.load %arg2[%c0_23, %c3_24, %c0_25, %c16_26] : memref<1x4x8x32xf32, #tpu.memory_space<vmem>>, vector<1x1x8x16xf32>
    %15 = vector.shape_cast %14 : vector<1x1x8x16xf32> to vector<8x16xf32>
    %16 = tpu.iota {dimensions = array<i32: 0>} : vector<16x8xi32>
    %17 = tpu.iota {dimensions = array<i32: 1>} : vector<16x8xi32>
    %c2_i32 = arith.constant 2 : i32
    %18 = vector.broadcast %c2_i32 : i32 to vector<16x8xi32>
    %19 = arith.muli %18, %17 : vector<16x8xi32>
    %20 = arith.cmpi eq, %16, %19 : vector<16x8xi32>
    %21 = arith.extui %20 : vector<16x8xi1> to vector<16x8xi32>
    %22 = arith.sitofp %21 : vector<16x8xi32> to vector<16x8xf32>
    %c2_i32_27 = arith.constant 2 : i32
    %23 = vector.broadcast %c2_i32_27 : i32 to vector<16x8xi32>
    %24 = arith.muli %23, %17 : vector<16x8xi32>
    %c1_i32 = arith.constant 1 : i32
    %25 = vector.broadcast %c1_i32 : i32 to vector<16x8xi32>
    %26 = arith.addi %24, %25 : vector<16x8xi32>
    %27 = arith.cmpi eq, %16, %26 : vector<16x8xi32>
    %28 = arith.extui %27 : vector<16x8xi1> to vector<16x8xi32>
    %29 = arith.sitofp %28 : vector<16x8xi32> to vector<16x8xf32>
    %c0_28 = arith.constant 0 : index
    %c0_29 = arith.constant 0 : index
    %30 = memref.load %arg3[%c0_28, %c0_29] : memref<8x4xf32, #tpu.memory_space<smem>>
    %31 = vector.broadcast %30 : f32 to vector<8x16xf32>
    %32 = arith.mulf %1, %31 : vector<8x16xf32>
    %33 = vector.broadcast %30 : f32 to vector<8x16xf32>
    %34 = arith.mulf %9, %33 : vector<8x16xf32>
    %c0_30 = arith.constant 0 : index
    %c1_31 = arith.constant 1 : index
    %35 = memref.load %arg3[%c0_30, %c1_31] : memref<8x4xf32, #tpu.memory_space<smem>>
    %36 = vector.broadcast %35 : f32 to vector<8x16xf32>
    %37 = arith.mulf %3, %36 : vector<8x16xf32>
    %38 = arith.addf %32, %37 : vector<8x16xf32>
    %39 = vector.broadcast %35 : f32 to vector<8x16xf32>
    %40 = arith.mulf %11, %39 : vector<8x16xf32>
    %41 = arith.addf %34, %40 : vector<8x16xf32>
    %c0_32 = arith.constant 0 : index
    %c2_33 = arith.constant 2 : index
    %42 = memref.load %arg3[%c0_32, %c2_33] : memref<8x4xf32, #tpu.memory_space<smem>>
    %43 = vector.broadcast %42 : f32 to vector<8x16xf32>
    %44 = arith.mulf %5, %43 : vector<8x16xf32>
    %45 = arith.addf %38, %44 : vector<8x16xf32>
    %46 = vector.broadcast %42 : f32 to vector<8x16xf32>
    %47 = arith.mulf %13, %46 : vector<8x16xf32>
    %48 = arith.addf %41, %47 : vector<8x16xf32>
    %c0_34 = arith.constant 0 : index
    %c3_35 = arith.constant 3 : index
    %49 = memref.load %arg3[%c0_34, %c3_35] : memref<8x4xf32, #tpu.memory_space<smem>>
    %50 = vector.broadcast %49 : f32 to vector<8x16xf32>
    %51 = arith.mulf %7, %50 : vector<8x16xf32>
    %52 = arith.addf %45, %51 : vector<8x16xf32>
    %53 = vector.broadcast %49 : f32 to vector<8x16xf32>
    %54 = arith.mulf %15, %53 : vector<8x16xf32>
    %55 = arith.addf %48, %54 : vector<8x16xf32>
    %56 = arith.maximumf %52, %55 : vector<8x16xf32>
    %c0_36 = arith.constant 0 : index
    %57 = memref.load %arg4[%c0_36] : memref<8xf32, #tpu.memory_space<smem>>
    %58 = vector.broadcast %57 : f32 to vector<8x16xf32>
    %59 = arith.addf %56, %58 : vector<8x16xf32>
    %cst = arith.constant dense<0.000000e+00> : vector<8x8xf32>
    %60 = tpu.matmul %59, %22, %cst {dimension_numbers = #tpu.dot_dimension_numbers<[1], [0], [0], [1], [0, 0, 1, 1], [], []>} : vector<8x16xf32>, vector<16x8xf32>, vector<8x8xf32> -> vector<8x8xf32>
    %cst_37 = arith.constant dense<0.000000e+00> : vector<8x8xf32>
    %61 = tpu.matmul %59, %29, %cst_37 {dimension_numbers = #tpu.dot_dimension_numbers<[1], [0], [0], [1], [0, 0, 1, 1], [], []>} : vector<8x16xf32>, vector<16x8xf32>, vector<8x8xf32> -> vector<8x8xf32>
    %62 = arith.maximumf %60, %61 : vector<8x8xf32>
    %cst_38 = arith.constant 0.000000e+00 : f32
    %63 = vector.broadcast %cst_38 : f32 to vector<8x8xf32>
    %64 = arith.maximumf %62, %63 : vector<8x8xf32>
    %c0_39 = arith.constant 0 : index
    %c0_40 = arith.constant 0 : index
    %c0_41 = arith.constant 0 : index
    %c0_42 = arith.constant 0 : index
    %65 = vector.load %arg5[%c0_39, %c0_40, %c0_41, %c0_42] : memref<1x8x8x8xf32, #tpu.memory_space<vmem>>, vector<1x1x8x8xf32>
    %66 = vector.shape_cast %65 : vector<1x1x8x8xf32> to vector<8x8xf32>
    %67 = vector.shape_cast %64 : vector<8x8xf32> to vector<1x1x8x8xf32>
    tpu.vector_store %arg5[%c0_39, %c0_40, %c0_41, %c0_42], %67 {strides = array<i32>} : memref<1x8x8x8xf32, #tpu.memory_space<vmem>>, vector<1x1x8x8xf32>,
    %c1_43 = arith.constant 1 : index
    %c0_44 = arith.constant 0 : index
    %68 = memref.load %arg3[%c1_43, %c0_44] : memref<8x4xf32, #tpu.memory_space<smem>>
    %69 = vector.broadcast %68 : f32 to vector<8x16xf32>
    %70 = arith.mulf %1, %69 : vector<8x16xf32>
    %71 = vector.broadcast %68 : f32 to vector<8x16xf32>
    %72 = arith.mulf %9, %71 : vector<8x16xf32>
    %c1_45 = arith.constant 1 : index
    %c1_46 = arith.constant 1 : index
    %73 = memref.load %arg3[%c1_45, %c1_46] : memref<8x4xf32, #tpu.memory_space<smem>>
    %74 = vector.broadcast %73 : f32 to vector<8x16xf32>
    %75 = arith.mulf %3, %74 : vector<8x16xf32>
    %76 = arith.addf %70, %75 : vector<8x16xf32>
    %77 = vector.broadcast %73 : f32 to vector<8x16xf32>
    %78 = arith.mulf %11, %77 : vector<8x16xf32>
    %79 = arith.addf %72, %78 : vector<8x16xf32>
    %c1_47 = arith.constant 1 : index
    %c2_48 = arith.constant 2 : index
    %80 = memref.load %arg3[%c1_47, %c2_48] : memref<8x4xf32, #tpu.memory_space<smem>>
    %81 = vector.broadcast %80 : f32 to vector<8x16xf32>
    %82 = arith.mulf %5, %81 : vector<8x16xf32>
    %83 = arith.addf %76, %82 : vector<8x16xf32>
    %84 = vector.broadcast %80 : f32 to vector<8x16xf32>
    %85 = arith.mulf %13, %84 : vector<8x16xf32>
    %86 = arith.addf %79, %85 : vector<8x16xf32>
    %c1_49 = arith.constant 1 : index
    %c3_50 = arith.constant 3 : index
    %87 = memref.load %arg3[%c1_49, %c3_50] : memref<8x4xf32, #tpu.memory_space<smem>>
    %88 = vector.broadcast %87 : f32 to vector<8x16xf32>
    %89 = arith.mulf %7, %88 : vector<8x16xf32>
    %90 = arith.addf %83, %89 : vector<8x16xf32>
    %91 = vector.broadcast %87 : f32 to vector<8x16xf32>
    %92 = arith.mulf %15, %91 : vector<8x16xf32>
    %93 = arith.addf %86, %92 : vector<8x16xf32>
    %94 = arith.maximumf %90, %93 : vector<8x16xf32>
    %c1_51 = arith.constant 1 : index
    %95 = memref.load %arg4[%c1_51] : memref<8xf32, #tpu.memory_space<smem>>
    %96 = vector.broadcast %95 : f32 to vector<8x16xf32>
    %97 = arith.addf %94, %96 : vector<8x16xf32>
    %cst_52 = arith.constant dense<0.000000e+00> : vector<8x8xf32>
    %98 = tpu.matmul %97, %22, %cst_52 {dimension_numbers = #tpu.dot_dimension_numbers<[1], [0], [0], [1], [0, 0, 1, 1], [], []>} : vector<8x16xf32>, vector<16x8xf32>, vector<8x8xf32> -> vector<8x8xf32>
    %cst_53 = arith.constant dense<0.000000e+00> : vector<8x8xf32>
    %99 = tpu.matmul %97, %29, %cst_53 {dimension_numbers = #tpu.dot_dimension_numbers<[1], [0], [0], [1], [0, 0, 1, 1], [], []>} : vector<8x16xf32>, vector<16x8xf32>, vector<8x8xf32> -> vector<8x8xf32>
    %100 = arith.maximumf %98, %99 : vector<8x8xf32>
    %cst_54 = arith.constant 0.000000e+00 : f32
    %101 = vector.broadcast %cst_54 : f32 to vector<8x8xf32>
    %102 = arith.maximumf %100, %101 : vector<8x8xf32>
    %c0_55 = arith.constant 0 : index
    %c1_56 = arith.constant 1 : index
    %c0_57 = arith.constant 0 : index
    %c0_58 = arith.constant 0 : index
    %103 = vector.load %arg5[%c0_55, %c1_56, %c0_57, %c0_58] : memref<1x8x8x8xf32, #tpu.memory_space<vmem>>, vector<1x1x8x8xf32>
    %104 = vector.shape_cast %103 : vector<1x1x8x8xf32> to vector<8x8xf32>
    %105 = vector.shape_cast %102 : vector<8x8xf32> to vector<1x1x8x8xf32>
    tpu.vector_store %arg5[%c0_55, %c1_56, %c0_57, %c0_58], %105 {strides = array<i32>} : memref<1x8x8x8xf32, #tpu.memory_space<vmem>>, vector<1x1x8x8xf32>,
    %c2_59 = arith.constant 2 : index
    %c0_60 = arith.constant 0 : index
    %106 = memref.load %arg3[%c2_59, %c0_60] : memref<8x4xf32, #tpu.memory_space<smem>>
    %107 = vector.broadcast %106 : f32 to vector<8x16xf32>
    %108 = arith.mulf %1, %107 : vector<8x16xf32>
    %109 = vector.broadcast %106 : f32 to vector<8x16xf32>
    %110 = arith.mulf %9, %109 : vector<8x16xf32>
    %c2_61 = arith.constant 2 : index
    %c1_62 = arith.constant 1 : index
    %111 = memref.load %arg3[%c2_61, %c1_62] : memref<8x4xf32, #tpu.memory_space<smem>>
    %112 = vector.broadcast %111 : f32 to vector<8x16xf32>
    %113 = arith.mulf %3, %112 : vector<8x16xf32>
    %114 = arith.addf %108, %113 : vector<8x16xf32>
    %115 = vector.broadcast %111 : f32 to vector<8x16xf32>
    %116 = arith.mulf %11, %115 : vector<8x16xf32>
    %117 = arith.addf %110, %116 : vector<8x16xf32>
    %c2_63 = arith.constant 2 : index
    %c2_64 = arith.constant 2 : index
    %118 = memref.load %arg3[%c2_63, %c2_64] : memref<8x4xf32, #tpu.memory_space<smem>>
    %119 = vector.broadcast %118 : f32 to vector<8x16xf32>
    %120 = arith.mulf %5, %119 : vector<8x16xf32>
    %121 = arith.addf %114, %120 : vector<8x16xf32>
    %122 = vector.broadcast %118 : f32 to vector<8x16xf32>
    %123 = arith.mulf %13, %122 : vector<8x16xf32>
    %124 = arith.addf %117, %123 : vector<8x16xf32>
    %c2_65 = arith.constant 2 : index
    %c3_66 = arith.constant 3 : index
    %125 = memref.load %arg3[%c2_65, %c3_66] : memref<8x4xf32, #tpu.memory_space<smem>>
    %126 = vector.broadcast %125 : f32 to vector<8x16xf32>
    %127 = arith.mulf %7, %126 : vector<8x16xf32>
    %128 = arith.addf %121, %127 : vector<8x16xf32>
    %129 = vector.broadcast %125 : f32 to vector<8x16xf32>
    %130 = arith.mulf %15, %129 : vector<8x16xf32>
    %131 = arith.addf %124, %130 : vector<8x16xf32>
    %132 = arith.maximumf %128, %131 : vector<8x16xf32>
    %c2_67 = arith.constant 2 : index
    %133 = memref.load %arg4[%c2_67] : memref<8xf32, #tpu.memory_space<smem>>
    %134 = vector.broadcast %133 : f32 to vector<8x16xf32>
    %135 = arith.addf %132, %134 : vector<8x16xf32>
    %cst_68 = arith.constant dense<0.000000e+00> : vector<8x8xf32>
    %136 = tpu.matmul %135, %22, %cst_68 {dimension_numbers = #tpu.dot_dimension_numbers<[1], [0], [0], [1], [0, 0, 1, 1], [], []>} : vector<8x16xf32>, vector<16x8xf32>, vector<8x8xf32> -> vector<8x8xf32>
    %cst_69 = arith.constant dense<0.000000e+00> : vector<8x8xf32>
    %137 = tpu.matmul %135, %29, %cst_69 {dimension_numbers = #tpu.dot_dimension_numbers<[1], [0], [0], [1], [0, 0, 1, 1], [], []>} : vector<8x16xf32>, vector<16x8xf32>, vector<8x8xf32> -> vector<8x8xf32>
    %138 = arith.maximumf %136, %137 : vector<8x8xf32>
    %cst_70 = arith.constant 0.000000e+00 : f32
    %139 = vector.broadcast %cst_70 : f32 to vector<8x8xf32>
    %140 = arith.maximumf %138, %139 : vector<8x8xf32>
    %c0_71 = arith.constant 0 : index
    %c2_72 = arith.constant 2 : index
    %c0_73 = arith.constant 0 : index
    %c0_74 = arith.constant 0 : index
    %141 = vector.load %arg5[%c0_71, %c2_72, %c0_73, %c0_74] : memref<1x8x8x8xf32, #tpu.memory_space<vmem>>, vector<1x1x8x8xf32>
    %142 = vector.shape_cast %141 : vector<1x1x8x8xf32> to vector<8x8xf32>
    %143 = vector.shape_cast %140 : vector<8x8xf32> to vector<1x1x8x8xf32>
    tpu.vector_store %arg5[%c0_71, %c2_72, %c0_73, %c0_74], %143 {strides = array<i32>} : memref<1x8x8x8xf32, #tpu.memory_space<vmem>>, vector<1x1x8x8xf32>,
    %c3_75 = arith.constant 3 : index
    %c0_76 = arith.constant 0 : index
    %144 = memref.load %arg3[%c3_75, %c0_76] : memref<8x4xf32, #tpu.memory_space<smem>>
    %145 = vector.broadcast %144 : f32 to vector<8x16xf32>
    %146 = arith.mulf %1, %145 : vector<8x16xf32>
    %147 = vector.broadcast %144 : f32 to vector<8x16xf32>
    %148 = arith.mulf %9, %147 : vector<8x16xf32>
    %c3_77 = arith.constant 3 : index
    %c1_78 = arith.constant 1 : index
    %149 = memref.load %arg3[%c3_77, %c1_78] : memref<8x4xf32, #tpu.memory_space<smem>>
    %150 = vector.broadcast %149 : f32 to vector<8x16xf32>
    %151 = arith.mulf %3, %150 : vector<8x16xf32>
    %152 = arith.addf %146, %151 : vector<8x16xf32>
    %153 = vector.broadcast %149 : f32 to vector<8x16xf32>
    %154 = arith.mulf %11, %153 : vector<8x16xf32>
    %155 = arith.addf %148, %154 : vector<8x16xf32>
    %c3_79 = arith.constant 3 : index
    %c2_80 = arith.constant 2 : index
    %156 = memref.load %arg3[%c3_79, %c2_80] : memref<8x4xf32, #tpu.memory_space<smem>>
    %157 = vector.broadcast %156 : f32 to vector<8x16xf32>
    %158 = arith.mulf %5, %157 : vector<8x16xf32>
    %159 = arith.addf %152, %158 : vector<8x16xf32>
    %160 = vector.broadcast %156 : f32 to vector<8x16xf32>
    %161 = arith.mulf %13, %160 : vector<8x16xf32>
    %162 = arith.addf %155, %161 : vector<8x16xf32>
    %c3_81 = arith.constant 3 : index
    %c3_82 = arith.constant 3 : index
    %163 = memref.load %arg3[%c3_81, %c3_82] : memref<8x4xf32, #tpu.memory_space<smem>>
    %164 = vector.broadcast %163 : f32 to vector<8x16xf32>
    %165 = arith.mulf %7, %164 : vector<8x16xf32>
    %166 = arith.addf %159, %165 : vector<8x16xf32>
    %167 = vector.broadcast %163 : f32 to vector<8x16xf32>
    %168 = arith.mulf %15, %167 : vector<8x16xf32>
    %169 = arith.addf %162, %168 : vector<8x16xf32>
    %170 = arith.maximumf %166, %169 : vector<8x16xf32>
    %c3_83 = arith.constant 3 : index
    %171 = memref.load %arg4[%c3_83] : memref<8xf32, #tpu.memory_space<smem>>
    %172 = vector.broadcast %171 : f32 to vector<8x16xf32>
    %173 = arith.addf %170, %172 : vector<8x16xf32>
    %cst_84 = arith.constant dense<0.000000e+00> : vector<8x8xf32>
    %174 = tpu.matmul %173, %22, %cst_84 {dimension_numbers = #tpu.dot_dimension_numbers<[1], [0], [0], [1], [0, 0, 1, 1], [], []>} : vector<8x16xf32>, vector<16x8xf32>, vector<8x8xf32> -> vector<8x8xf32>
    %cst_85 = arith.constant dense<0.000000e+00> : vector<8x8xf32>
    %175 = tpu.matmul %173, %29, %cst_85 {dimension_numbers = #tpu.dot_dimension_numbers<[1], [0], [0], [1], [0, 0, 1, 1], [], []>} : vector<8x16xf32>, vector<16x8xf32>, vector<8x8xf32> -> vector<8x8xf32>
    %176 = arith.maximumf %174, %175 : vector<8x8xf32>
    %cst_86 = arith.constant 0.000000e+00 : f32
    %177 = vector.broadcast %cst_86 : f32 to vector<8x8xf32>
    %178 = arith.maximumf %176, %177 : vector<8x8xf32>
    %c0_87 = arith.constant 0 : index
    %c3_88 = arith.constant 3 : index
    %c0_89 = arith.constant 0 : index
    %c0_90 = arith.constant 0 : index
    %179 = vector.load %arg5[%c0_87, %c3_88, %c0_89, %c0_90] : memref<1x8x8x8xf32, #tpu.memory_space<vmem>>, vector<1x1x8x8xf32>
    %180 = vector.shape_cast %179 : vector<1x1x8x8xf32> to vector<8x8xf32>
    %181 = vector.shape_cast %178 : vector<8x8xf32> to vector<1x1x8x8xf32>
    tpu.vector_store %arg5[%c0_87, %c3_88, %c0_89, %c0_90], %181 {strides = array<i32>} : memref<1x8x8x8xf32, #tpu.memory_space<vmem>>, vector<1x1x8x8xf32>,
    %c4 = arith.constant 4 : index
    %c0_91 = arith.constant 0 : index
    %182 = memref.load %arg3[%c4, %c0_91] : memref<8x4xf32, #tpu.memory_space<smem>>
    %183 = vector.broadcast %182 : f32 to vector<8x16xf32>
    %184 = arith.mulf %1, %183 : vector<8x16xf32>
    %185 = vector.broadcast %182 : f32 to vector<8x16xf32>
    %186 = arith.mulf %9, %185 : vector<8x16xf32>
    %c4_92 = arith.constant 4 : index
    %c1_93 = arith.constant 1 : index
    %187 = memref.load %arg3[%c4_92, %c1_93] : memref<8x4xf32, #tpu.memory_space<smem>>
    %188 = vector.broadcast %187 : f32 to vector<8x16xf32>
    %189 = arith.mulf %3, %188 : vector<8x16xf32>
    %190 = arith.addf %184, %189 : vector<8x16xf32>
    %191 = vector.broadcast %187 : f32 to vector<8x16xf32>
    %192 = arith.mulf %11, %191 : vector<8x16xf32>
    %193 = arith.addf %186, %192 : vector<8x16xf32>
    %c4_94 = arith.constant 4 : index
    %c2_95 = arith.constant 2 : index
    %194 = memref.load %arg3[%c4_94, %c2_95] : memref<8x4xf32, #tpu.memory_space<smem>>
    %195 = vector.broadcast %194 : f32 to vector<8x16xf32>
    %196 = arith.mulf %5, %195 : vector<8x16xf32>
    %197 = arith.addf %190, %196 : vector<8x16xf32>
    %198 = vector.broadcast %194 : f32 to vector<8x16xf32>
    %199 = arith.mulf %13, %198 : vector<8x16xf32>
    %200 = arith.addf %193, %199 : vector<8x16xf32>
    %c4_96 = arith.constant 4 : index
    %c3_97 = arith.constant 3 : index
    %201 = memref.load %arg3[%c4_96, %c3_97] : memref<8x4xf32, #tpu.memory_space<smem>>
    %202 = vector.broadcast %201 : f32 to vector<8x16xf32>
    %203 = arith.mulf %7, %202 : vector<8x16xf32>
    %204 = arith.addf %197, %203 : vector<8x16xf32>
    %205 = vector.broadcast %201 : f32 to vector<8x16xf32>
    %206 = arith.mulf %15, %205 : vector<8x16xf32>
    %207 = arith.addf %200, %206 : vector<8x16xf32>
    %208 = arith.maximumf %204, %207 : vector<8x16xf32>
    %c4_98 = arith.constant 4 : index
    %209 = memref.load %arg4[%c4_98] : memref<8xf32, #tpu.memory_space<smem>>
    %210 = vector.broadcast %209 : f32 to vector<8x16xf32>
    %211 = arith.addf %208, %210 : vector<8x16xf32>
    %cst_99 = arith.constant dense<0.000000e+00> : vector<8x8xf32>
    %212 = tpu.matmul %211, %22, %cst_99 {dimension_numbers = #tpu.dot_dimension_numbers<[1], [0], [0], [1], [0, 0, 1, 1], [], []>} : vector<8x16xf32>, vector<16x8xf32>, vector<8x8xf32> -> vector<8x8xf32>
    %cst_100 = arith.constant dense<0.000000e+00> : vector<8x8xf32>
    %213 = tpu.matmul %211, %29, %cst_100 {dimension_numbers = #tpu.dot_dimension_numbers<[1], [0], [0], [1], [0, 0, 1, 1], [], []>} : vector<8x16xf32>, vector<16x8xf32>, vector<8x8xf32> -> vector<8x8xf32>
    %214 = arith.maximumf %212, %213 : vector<8x8xf32>
    %cst_101 = arith.constant 0.000000e+00 : f32
    %215 = vector.broadcast %cst_101 : f32 to vector<8x8xf32>
    %216 = arith.maximumf %214, %215 : vector<8x8xf32>
    %c0_102 = arith.constant 0 : index
    %c4_103 = arith.constant 4 : index
    %c0_104 = arith.constant 0 : index
    %c0_105 = arith.constant 0 : index
    %217 = vector.load %arg5[%c0_102, %c4_103, %c0_104, %c0_105] : memref<1x8x8x8xf32, #tpu.memory_space<vmem>>, vector<1x1x8x8xf32>
    %218 = vector.shape_cast %217 : vector<1x1x8x8xf32> to vector<8x8xf32>
    %219 = vector.shape_cast %216 : vector<8x8xf32> to vector<1x1x8x8xf32>
    tpu.vector_store %arg5[%c0_102, %c4_103, %c0_104, %c0_105], %219 {strides = array<i32>} : memref<1x8x8x8xf32, #tpu.memory_space<vmem>>, vector<1x1x8x8xf32>,
    %c5 = arith.constant 5 : index
    %c0_106 = arith.constant 0 : index
    %220 = memref.load %arg3[%c5, %c0_106] : memref<8x4xf32, #tpu.memory_space<smem>>
    %221 = vector.broadcast %220 : f32 to vector<8x16xf32>
    %222 = arith.mulf %1, %221 : vector<8x16xf32>
    %223 = vector.broadcast %220 : f32 to vector<8x16xf32>
    %224 = arith.mulf %9, %223 : vector<8x16xf32>
    %c5_107 = arith.constant 5 : index
    %c1_108 = arith.constant 1 : index
    %225 = memref.load %arg3[%c5_107, %c1_108] : memref<8x4xf32, #tpu.memory_space<smem>>
    %226 = vector.broadcast %225 : f32 to vector<8x16xf32>
    %227 = arith.mulf %3, %226 : vector<8x16xf32>
    %228 = arith.addf %222, %227 : vector<8x16xf32>
    %229 = vector.broadcast %225 : f32 to vector<8x16xf32>
    %230 = arith.mulf %11, %229 : vector<8x16xf32>
    %231 = arith.addf %224, %230 : vector<8x16xf32>
    %c5_109 = arith.constant 5 : index
    %c2_110 = arith.constant 2 : index
    %232 = memref.load %arg3[%c5_109, %c2_110] : memref<8x4xf32, #tpu.memory_space<smem>>
    %233 = vector.broadcast %232 : f32 to vector<8x16xf32>
    %234 = arith.mulf %5, %233 : vector<8x16xf32>
    %235 = arith.addf %228, %234 : vector<8x16xf32>
    %236 = vector.broadcast %232 : f32 to vector<8x16xf32>
    %237 = arith.mulf %13, %236 : vector<8x16xf32>
    %238 = arith.addf %231, %237 : vector<8x16xf32>
    %c5_111 = arith.constant 5 : index
    %c3_112 = arith.constant 3 : index
    %239 = memref.load %arg3[%c5_111, %c3_112] : memref<8x4xf32, #tpu.memory_space<smem>>
    %240 = vector.broadcast %239 : f32 to vector<8x16xf32>
    %241 = arith.mulf %7, %240 : vector<8x16xf32>
    %242 = arith.addf %235, %241 : vector<8x16xf32>
    %243 = vector.broadcast %239 : f32 to vector<8x16xf32>
    %244 = arith.mulf %15, %243 : vector<8x16xf32>
    %245 = arith.addf %238, %244 : vector<8x16xf32>
    %246 = arith.maximumf %242, %245 : vector<8x16xf32>
    %c5_113 = arith.constant 5 : index
    %247 = memref.load %arg4[%c5_113] : memref<8xf32, #tpu.memory_space<smem>>
    %248 = vector.broadcast %247 : f32 to vector<8x16xf32>
    %249 = arith.addf %246, %248 : vector<8x16xf32>
    %cst_114 = arith.constant dense<0.000000e+00> : vector<8x8xf32>
    %250 = tpu.matmul %249, %22, %cst_114 {dimension_numbers = #tpu.dot_dimension_numbers<[1], [0], [0], [1], [0, 0, 1, 1], [], []>} : vector<8x16xf32>, vector<16x8xf32>, vector<8x8xf32> -> vector<8x8xf32>
    %cst_115 = arith.constant dense<0.000000e+00> : vector<8x8xf32>
    %251 = tpu.matmul %249, %29, %cst_115 {dimension_numbers = #tpu.dot_dimension_numbers<[1], [0], [0], [1], [0, 0, 1, 1], [], []>} : vector<8x16xf32>, vector<16x8xf32>, vector<8x8xf32> -> vector<8x8xf32>
    %252 = arith.maximumf %250, %251 : vector<8x8xf32>
    %cst_116 = arith.constant 0.000000e+00 : f32
    %253 = vector.broadcast %cst_116 : f32 to vector<8x8xf32>
    %254 = arith.maximumf %252, %253 : vector<8x8xf32>
    %c0_117 = arith.constant 0 : index
    %c5_118 = arith.constant 5 : index
    %c0_119 = arith.constant 0 : index
    %c0_120 = arith.constant 0 : index
    %255 = vector.load %arg5[%c0_117, %c5_118, %c0_119, %c0_120] : memref<1x8x8x8xf32, #tpu.memory_space<vmem>>, vector<1x1x8x8xf32>
    %256 = vector.shape_cast %255 : vector<1x1x8x8xf32> to vector<8x8xf32>
    %257 = vector.shape_cast %254 : vector<8x8xf32> to vector<1x1x8x8xf32>
    tpu.vector_store %arg5[%c0_117, %c5_118, %c0_119, %c0_120], %257 {strides = array<i32>} : memref<1x8x8x8xf32, #tpu.memory_space<vmem>>, vector<1x1x8x8xf32>,
    %c6 = arith.constant 6 : index
    %c0_121 = arith.constant 0 : index
    %258 = memref.load %arg3[%c6, %c0_121] : memref<8x4xf32, #tpu.memory_space<smem>>
    %259 = vector.broadcast %258 : f32 to vector<8x16xf32>
    %260 = arith.mulf %1, %259 : vector<8x16xf32>
    %261 = vector.broadcast %258 : f32 to vector<8x16xf32>
    %262 = arith.mulf %9, %261 : vector<8x16xf32>
    %c6_122 = arith.constant 6 : index
    %c1_123 = arith.constant 1 : index
    %263 = memref.load %arg3[%c6_122, %c1_123] : memref<8x4xf32, #tpu.memory_space<smem>>
    %264 = vector.broadcast %263 : f32 to vector<8x16xf32>
    %265 = arith.mulf %3, %264 : vector<8x16xf32>
    %266 = arith.addf %260, %265 : vector<8x16xf32>
    %267 = vector.broadcast %263 : f32 to vector<8x16xf32>
    %268 = arith.mulf %11, %267 : vector<8x16xf32>
    %269 = arith.addf %262, %268 : vector<8x16xf32>
    %c6_124 = arith.constant 6 : index
    %c2_125 = arith.constant 2 : index
    %270 = memref.load %arg3[%c6_124, %c2_125] : memref<8x4xf32, #tpu.memory_space<smem>>
    %271 = vector.broadcast %270 : f32 to vector<8x16xf32>
    %272 = arith.mulf %5, %271 : vector<8x16xf32>
    %273 = arith.addf %266, %272 : vector<8x16xf32>
    %274 = vector.broadcast %270 : f32 to vector<8x16xf32>
    %275 = arith.mulf %13, %274 : vector<8x16xf32>
    %276 = arith.addf %269, %275 : vector<8x16xf32>
    %c6_126 = arith.constant 6 : index
    %c3_127 = arith.constant 3 : index
    %277 = memref.load %arg3[%c6_126, %c3_127] : memref<8x4xf32, #tpu.memory_space<smem>>
    %278 = vector.broadcast %277 : f32 to vector<8x16xf32>
    %279 = arith.mulf %7, %278 : vector<8x16xf32>
    %280 = arith.addf %273, %279 : vector<8x16xf32>
    %281 = vector.broadcast %277 : f32 to vector<8x16xf32>
    %282 = arith.mulf %15, %281 : vector<8x16xf32>
    %283 = arith.addf %276, %282 : vector<8x16xf32>
    %284 = arith.maximumf %280, %283 : vector<8x16xf32>
    %c6_128 = arith.constant 6 : index
    %285 = memref.load %arg4[%c6_128] : memref<8xf32, #tpu.memory_space<smem>>
    %286 = vector.broadcast %285 : f32 to vector<8x16xf32>
    %287 = arith.addf %284, %286 : vector<8x16xf32>
    %cst_129 = arith.constant dense<0.000000e+00> : vector<8x8xf32>
    %288 = tpu.matmul %287, %22, %cst_129 {dimension_numbers = #tpu.dot_dimension_numbers<[1], [0], [0], [1], [0, 0, 1, 1], [], []>} : vector<8x16xf32>, vector<16x8xf32>, vector<8x8xf32> -> vector<8x8xf32>
    %cst_130 = arith.constant dense<0.000000e+00> : vector<8x8xf32>
    %289 = tpu.matmul %287, %29, %cst_130 {dimension_numbers = #tpu.dot_dimension_numbers<[1], [0], [0], [1], [0, 0, 1, 1], [], []>} : vector<8x16xf32>, vector<16x8xf32>, vector<8x8xf32> -> vector<8x8xf32>
    %290 = arith.maximumf %288, %289 : vector<8x8xf32>
    %cst_131 = arith.constant 0.000000e+00 : f32
    %291 = vector.broadcast %cst_131 : f32 to vector<8x8xf32>
    %292 = arith.maximumf %290, %291 : vector<8x8xf32>
    %c0_132 = arith.constant 0 : index
    %c6_133 = arith.constant 6 : index
    %c0_134 = arith.constant 0 : index
    %c0_135 = arith.constant 0 : index
    %293 = vector.load %arg5[%c0_132, %c6_133, %c0_134, %c0_135] : memref<1x8x8x8xf32, #tpu.memory_space<vmem>>, vector<1x1x8x8xf32>
    %294 = vector.shape_cast %293 : vector<1x1x8x8xf32> to vector<8x8xf32>
    %295 = vector.shape_cast %292 : vector<8x8xf32> to vector<1x1x8x8xf32>
    tpu.vector_store %arg5[%c0_132, %c6_133, %c0_134, %c0_135], %295 {strides = array<i32>} : memref<1x8x8x8xf32, #tpu.memory_space<vmem>>, vector<1x1x8x8xf32>,
    %c7 = arith.constant 7 : index
    %c0_136 = arith.constant 0 : index
    %296 = memref.load %arg3[%c7, %c0_136] : memref<8x4xf32, #tpu.memory_space<smem>>
    %297 = vector.broadcast %296 : f32 to vector<8x16xf32>
    %298 = arith.mulf %1, %297 : vector<8x16xf32>
    %299 = vector.broadcast %296 : f32 to vector<8x16xf32>
    %300 = arith.mulf %9, %299 : vector<8x16xf32>
    %c7_137 = arith.constant 7 : index
    %c1_138 = arith.constant 1 : index
    %301 = memref.load %arg3[%c7_137, %c1_138] : memref<8x4xf32, #tpu.memory_space<smem>>
    %302 = vector.broadcast %301 : f32 to vector<8x16xf32>
    %303 = arith.mulf %3, %302 : vector<8x16xf32>
    %304 = arith.addf %298, %303 : vector<8x16xf32>
    %305 = vector.broadcast %301 : f32 to vector<8x16xf32>
    %306 = arith.mulf %11, %305 : vector<8x16xf32>
    %307 = arith.addf %300, %306 : vector<8x16xf32>
    %c7_139 = arith.constant 7 : index
    %c2_140 = arith.constant 2 : index
    %308 = memref.load %arg3[%c7_139, %c2_140] : memref<8x4xf32, #tpu.memory_space<smem>>
    %309 = vector.broadcast %308 : f32 to vector<8x16xf32>
    %310 = arith.mulf %5, %309 : vector<8x16xf32>
    %311 = arith.addf %304, %310 : vector<8x16xf32>
    %312 = vector.broadcast %308 : f32 to vector<8x16xf32>
    %313 = arith.mulf %13, %312 : vector<8x16xf32>
    %314 = arith.addf %307, %313 : vector<8x16xf32>
    %c7_141 = arith.constant 7 : index
    %c3_142 = arith.constant 3 : index
    %315 = memref.load %arg3[%c7_141, %c3_142] : memref<8x4xf32, #tpu.memory_space<smem>>
    %316 = vector.broadcast %315 : f32 to vector<8x16xf32>
    %317 = arith.mulf %7, %316 : vector<8x16xf32>
    %318 = arith.addf %311, %317 : vector<8x16xf32>
    %319 = vector.broadcast %315 : f32 to vector<8x16xf32>
    %320 = arith.mulf %15, %319 : vector<8x16xf32>
    %321 = arith.addf %314, %320 : vector<8x16xf32>
    %322 = arith.maximumf %318, %321 : vector<8x16xf32>
    %c7_143 = arith.constant 7 : index
    %323 = memref.load %arg4[%c7_143] : memref<8xf32, #tpu.memory_space<smem>>
    %324 = vector.broadcast %323 : f32 to vector<8x16xf32>
    %325 = arith.addf %322, %324 : vector<8x16xf32>
    %cst_144 = arith.constant dense<0.000000e+00> : vector<8x8xf32>
    %326 = tpu.matmul %325, %22, %cst_144 {dimension_numbers = #tpu.dot_dimension_numbers<[1], [0], [0], [1], [0, 0, 1, 1], [], []>} : vector<8x16xf32>, vector<16x8xf32>, vector<8x8xf32> -> vector<8x8xf32>
    %cst_145 = arith.constant dense<0.000000e+00> : vector<8x8xf32>
    %327 = tpu.matmul %325, %29, %cst_145 {dimension_numbers = #tpu.dot_dimension_numbers<[1], [0], [0], [1], [0, 0, 1, 1], [], []>} : vector<8x16xf32>, vector<16x8xf32>, vector<8x8xf32> -> vector<8x8xf32>
    %328 = arith.maximumf %326, %327 : vector<8x8xf32>
    %cst_146 = arith.constant 0.000000e+00 : f32
    %329 = vector.broadcast %cst_146 : f32 to vector<8x8xf32>
    %330 = arith.maximumf %328, %329 : vector<8x8xf32>
    %c0_147 = arith.constant 0 : index
    %c7_148 = arith.constant 7 : index
    %c0_149 = arith.constant 0 : index
    %c0_150 = arith.constant 0 : index
    %331 = vector.load %arg5[%c0_147, %c7_148, %c0_149, %c0_150] : memref<1x8x8x8xf32, #tpu.memory_space<vmem>>, vector<1x1x8x8xf32>
    %332 = vector.shape_cast %331 : vector<1x1x8x8xf32> to vector<8x8xf32>
    %333 = vector.shape_cast %330 : vector<8x8xf32> to vector<1x1x8x8xf32>
    tpu.vector_store %arg5[%c0_147, %c7_148, %c0_149, %c0_150], %333 {strides = array<i32>} : memref<1x8x8x8xf32, #tpu.memory_space<vmem>>, vector<1x1x8x8xf32>,
    return
  }
  func.func @transform_0(%arg0: i32, %arg1: i32) -> (i32, i32, i32, i32) {
    %c0_i32 = arith.constant 0 : i32
    %c0_i32_0 = arith.constant 0 : i32
    %c0_i32_1 = arith.constant 0 : i32
    return %arg0, %c0_i32, %arg1, %c0_i32_0 : i32, i32, i32, i32
  }
  func.func @transform_1(%arg0: i32, %arg1: i32) -> (i32, i32) {
    %c0_i32 = arith.constant 0 : i32
    %c0_i32_0 = arith.constant 0 : i32
    %c0_i32_1 = arith.constant 0 : i32
    return %c0_i32, %c0_i32_0 : i32, i32
  }
  func.func @transform_2(%arg0: i32, %arg1: i32) -> i32 {
    %c0_i32 = arith.constant 0 : i32
    %c0_i32_0 = arith.constant 0 : i32
    return %c0_i32 : i32
  }
  func.func @transform_3(%arg0: i32, %arg1: i32) -> (i32, i32, i32, i32) {
    %c0_i32 = arith.constant 0 : i32
    %c0_i32_0 = arith.constant 0 : i32
    %c0_i32_1 = arith.constant 0 : i32
    return %arg0, %c0_i32, %arg1, %c0_i32_0 : i32, i32, i32, i32
  }
}

</mosaic_0001>

<bundles_post_ra>
// kernel: tpu_custom_call.1
= control target key start
LH: loop header
LB: loop body
LE: loop exit
PB: predicated region body
PF: predicated region fallthrough
CT: control target
= control target key end

     0   :  { %s1722_s0 = inlined_call_operand.hbm [shape: f32[2,4,8,32], index: 0, kind: input, shape index: {}]   ;;  %s1723_s1 = inlined_call_operand.vmem [shape: f32[8,4], index: 1, kind: input, shape index: {}]   ;;  %s1724_s2 = inlined_call_operand.vmem [shape: f32[8], index: 2, kind: input, shape index: {}]   ;;  %s1725_s3 = inlined_call_operand.hbm [shape: f32[2,8,8,8], index: 3, kind: output, shape index: {}]  }
   0x1   :  { %1726 = sst [smem:[#allocation14_spill]] %s1723_s1 }
   0x2   :  { %8 = vsyncpa [#allocation3], 0 }
   0x3   :  { %10 = vsyncpa [#allocation3 + $0x1], 0 }
   0x4   :  { %11 = vsyncpa [#allocation5], 0 }
   0x5   :  { %12 = vsyncpa [#allocation8], 0 }
   0x6   :  { %13 = vsyncpa [#allocation4], 0 }
   0x7   :  { %15 = vsyncpa [#allocation4 + $0x1], 0  ;;  %s1336_s12 = smov 0   ;;  %s1338_s13 = smov 0  }
   0x8   :  { %s1340_s14 = smov 0   ;;  %s1342_s15 = smov 0  }
   0x9   :  { %s1344_s16 = smov 0   ;;  %s1346_s17 = smov 0  }
   0xa LB: > { %s946_s18 = sadd.s32 4294967295, %s1306_s17   ;;  %s947_s19 = sadd.s32 4294967294, %s1306_s17   ;;  %s1306_s17 = sphi %s1346_s17, %s21_s17   ;;  %s1302_s16 = sphi %s1344_s16, %s1747_s16   ;;  %s1298_s15 = sphi %s1342_s15, %s1746_s15   ;;  %s1294_s14 = sphi %s1340_s14, %s1745_s14   ;;  %s1290_s13 = sphi %s1338_s13, %s1744_s13   ;;  %s1286_s12 = sphi %s1336_s12, %s1743_s12  }
   0xb   : > { %s42_s20 = sadd.s32 1, %s1294_s14  ;;  %p49_p0 = scmp.ne.s32.totalorder %s1294_s14, %s1290_s13 }
   0xc   : > { %p50_p1 = scmp.eq.s32.totalorder %s1306_s17, 0  ;;  %p55_p2 = scmp.ne.s32.totalorder %s1290_s13, %s1286_s12 }
   0xd   : > { %p1374_p3 = scmp.eq.s32.totalorder %s946_s18, 0  ;;  %p123_p4 = scmp.eq.s32.totalorder %s946_s18, 1 }
   0xe   : > { %p1378_p5 = por %p50_p1, %p49_p0  ;;  %p129_p6 = scmp.eq.s32.totalorder %s947_s19, 1 }
   0xf   : > { %p1384_p7 = por %p1374_p3, %p55_p2  ;;  %p1388_p8 = por %p123_p4, %p49_p0 }
  0x10   : > { %p1392_p9 = por %p129_p6, %p55_p2  ;;  %p948_p10 = scmp.ge.s32.totalorder %s1306_s17, 1 }
  0x11   : > { %p136_p11 = scmp.lt.s32.totalorder %s1306_s17, 3  ;;  %s1732_s1 = sld [smem:[#allocation14_spill]] }
  0x12   : > { %p951_p13 = scmp.ge.s32.totalorder %s1306_s17, 2  ;;  %p1096_p0 = scmp.lt.s32.totalorder %s1306_s17, 2 }
  0x13   : > { %p1401_p12 = pnand %p948_p10, %p136_p11  ;;  %s158_s5 = sshll.u32 %s1724_s2, 4  ;;  %s159_s5 = int_to_ptr.vmem [resolvable:$true] %s158_s5 }
  0x14   : > { %p1414_p2 = pnand %p1096_p0, %p1378_p5  ;;  %s1308_s7 = smov [#allocation6]  }
  0x15   : > { %p1079_p1 = pneg %p1401_p12  ;;  %s1309_s8 = smov [#allocation7]  }
  0x16   : > { %s33_s9 = sadd.s32 1, %s1302_s16  ;;  %s169_s10 = sand.u32 1, %s1294_s14  }
  0x17   : > { %s148_s28 = sshll.u32 %s1732_s1, 4  ;;  %p1080_p4 = pnand %p1079_p1, %p1374_p3  ;;  %s149_s28 = int_to_ptr.vmem [resolvable:$true] %s148_s28 }
  0x18   : > { %p35_p6 = scmp.ge.s32.totalorder %s33_s9, 2  ;;  %s952_s11 = sshll.u32 %s169_s10, 5 }
  0x19   : > { %1082 = dma.vmem_to_smem (!%p1080_p4), %s149_s28, 128, %s1308_s7, [#allocation5]  }
  0x1a   : > { %1085 = dma.vmem_to_smem (!%p1080_p4), %s159_s5, 16, %s1309_s8, [#allocation8]  }
  0x1b   : > { %s1065_s18 = sshll.u32 %s1302_s16, 5  ;;  %s1749_s9 = smov (%p35_p6, %s33_s9), 0 }
  0x1c   : > { %s179_s26 = scalar_lea.hbm %s1722_s0, %s1065_s18  ;;  %s37_s27 = ssub.s32 %s1302_s16, %s1749_s9 }
  0x1d   : > { %s180_s30 = sshll.u32 %s179_s26, 4  ;;  %p40_p5 = scmp.eq.s32.totalorder %s37_s27, 0  ;;  %s181_s30 = int_to_ptr.hbm [resolvable:$true] %s180_s30 }
  0x1e   : > { %s173_s28 = scalar_lea.vmem [#allocation2], %s952_s11  ;;  %s170_s7 = scalar_lea.sflag [#allocation3], %s169_s10 }
  0x1f   : > { %s182_s4 = sshll.u32 %s173_s28, 4  ;;  %s1310_s8 = smov 128   ;;  %s183_s4 = int_to_ptr.vmem [resolvable:$true] %s182_s4 }
  0x20   : > { %s1433_s5 = scalar_select %p40_p5, %s1294_s14, %s42_s20  }
  0x21   : > { %s1311_s1 = smov 8   ;;  %194 = sbr.rel (%p1401_p12) target bundleno = 346 (0x15a), region = 32 }
  0x22   : > { %1089 = dma.hbm_to_vmem [thread:$0]  (!%p1414_p2), %s181_s30, 512, %s183_s4, %s170_s7, %s1310_s8, %s1310_s8, %s1311_s1  }
  0x23   : > { %s1440_s18 = sand.u32 (!%p1401_p12), 1, %s1290_s13  }
  0x24   : > { %s956_s11 = sshll.u32 (!%p1401_p12), %s1440_s18, 5  ;;  %s197_s19 = scalar_lea.sflag (!%p1401_p12), [#allocation3], %s1440_s18 }
  0x25   : > { %s200_s22 = scalar_lea.vmem (!%p1401_p12), [#allocation2], %s956_s11 }
  0x26   : > { %1269 = dma.done.wait (%p1384_p7), %s197_s19, 512  }
  0x27   : > { %1271 = vsyncadd (%p1384_p7), %s197_s19, 4294966784 }
  0x28   : > { %1273 = dma.done.wait (%p1374_p3), [#allocation5], 128  }
  0x29   : > { %1275 = vsyncadd (%p1374_p3), [#allocation5], 4294967168 }
  0x2a   : > { %1277 = dma.done.wait (%p1374_p3), [#allocation8], 16  }
  0x2b   : > { %1279 = vsyncadd (%p1374_p3), [#allocation8], 4294967280 }
  0x2c   : > { %216 = sfence }
  0x2d   : > { %s976_s1 = sld [smem:[#allocation6 + $0x80]]  ;;  %v1456_v0 = vld [vmem:[%s200_s22] sm:$0xff]  ;;  %v1458_v1 = vld [vmem:[%s200_s22 + $0x8] sm:$0xff]  ;;  %v1460_v2 = vld [vmem:[%s200_s22 + $0x10] sm:$0xff]  ;;  %vm284_vm4 = vcmask 130048   ;;  %vm330_vm5 = vcmask 64512  }
  0x2e   : > { %s977_s20 = sld [smem:[#allocation6 + $0x81]]  ;;  %v1462_v4 = vld [vmem:[%s200_s22 + $0x18] sm:$0xff]  ;;  %s1312_s22 = smov 112  }
  0x2f   : > { %s978_s29 = sld [smem:[#allocation6 + $0x82]] }
  0x30   : > { %s979_s6 = sld [smem:[#allocation6 + $0x83]] }
  0x31   : > { %s1000_s23 = sld [smem:[#allocation6 + $0x180]] }
  0x32   : > { %s1001_s10 = sld [smem:[#allocation6 + $0x181]] }
  0x33   : > { %v333_v3 = vstv %s976_s1  ;;  %s1002_s26 = sld [smem:[#allocation6 + $0x182]] }
  0x34   : > { %v334_v5 = vmul.f32 %v333_v3, %v1456_v0  ;;  %v336_v6 = vstv %s977_s20  ;;  %s1003_s21 = sld [smem:[#allocation6 + $0x183]] }
  0x35   : > { %v337_v7 = vmul.f32 %v1458_v1, %v336_v6  ;;  %v340_v8 = vstv %s978_s29  ;;  %s261_s27 = sld [smem:[#allocation6]] }
  0x36   : > { %v341_v9 = vmul.f32 %v1460_v2, %v340_v8  ;;  %v344_v10 = vstv %s979_s6  ;;  %s967_s30 = sld [smem:[#allocation6 + $0x1]] }
  0x37   : > { %v338_v11 = vadd.f32 %v337_v7, %v334_v5  ;;  %v345_v12 = vmul.f32 %v1462_v4, %v344_v10  ;;  %v473_v13 = vstv %s1000_s23  ;;  %s968_s28 = sld [smem:[#allocation6 + $0x2]] }
  0x38   : > { %v474_v14 = vmul.f32 %v473_v13, %v1456_v0  ;;  %v476_v15 = vstv %s1001_s10  ;;  %s969_s4 = sld [smem:[#allocation6 + $0x3]] }
  0x39   : > { %v342_v16 = vadd.f32 %v341_v9, %v338_v11  ;;  %v477_v17 = vmul.f32 %v1458_v1, %v476_v15  ;;  %v480_v18 = vstv %s1002_s26  ;;  %s988_s7 = sld [smem:[#allocation6 + $0x100]] }
  0x3a   : > { %v481_v19 = vmul.f32 %v1460_v2, %v480_v18  ;;  %v484_v20 = vstv %s1003_s21  ;;  %s989_s8 = sld [smem:[#allocation6 + $0x101]] }
  0x3b   : > { %v1471_v21 = vadd.f32 %v345_v12, %v342_v16  ;;  %v478_v22 = vadd.f32 %v477_v17, %v474_v14  ;;  %v485_v23 = vmul.f32 %v1462_v4, %v484_v20  ;;  %v262_v24 = vstv %s261_s27  ;;  %s990_s11 = sld [smem:[#allocation6 + $0x102]] }
  0x3c   : > { %v263_v25 = vmul.f32 %v262_v24, %v1456_v0  ;;  %v265_v26 = vstv %s967_s30  ;;  %s991_s19 = sld [smem:[#allocation6 + $0x103]] }
  0x3d   : > { %348 = vrot.lane.b32.xlu0 %v1471_v21, %s1312_s22  ;;  %v482_v27 = vadd.f32 %v481_v19, %v478_v22  ;;  %v266_v28 = vmul.f32 %v1458_v1, %v265_v26  ;;  %v269_v29 = vstv %s968_s28  ;;  %s1048_s1 = sld [smem:[#allocation6 + $0x380]] }
  0x3e   : > { %v270_v30 = vmul.f32 %v1460_v2, %v269_v29  ;;  %v273_v31 = vstv %s969_s4  ;;  %s1049_s20 = sld [smem:[#allocation6 + $0x381]] }
  0x3f   : > { %v1479_v32 = vadd.f32 %v485_v23, %v482_v27  ;;  %v267_v33 = vadd.f32 %v266_v28, %v263_v25  ;;  %v274_v34 = vmul.f32 %v1462_v4, %v273_v31  ;;  %v403_v35 = vstv %s988_s7  ;;  %s1050_s29 = sld [smem:[#allocation6 + $0x382]] }
  0x40   : > { %v404_v36 = vmul.f32 %v403_v35, %v1456_v0  ;;  %v406_v37 = vstv %s989_s8  ;;  %s1051_s6 = sld [smem:[#allocation6 + $0x383]] }
  0x41   : > { %488 = vrot.lane.b32.xlu1 %v1479_v32, %s1312_s22  ;;  %v271_v38 = vadd.f32 %v270_v30, %v267_v33  ;;  %v407_v39 = vmul.f32 %v1458_v1, %v406_v37  ;;  %v410_v40 = vstv %s990_s11  ;;  %s1036_s23 = sld [smem:[#allocation6 + $0x300]]  ;;  %v242_v33 = vlaneseq }
  0x42   : > { %v411_v41 = vmul.f32 %v1460_v2, %v410_v40  ;;  %v414_v42 = vstv %s991_s19  ;;  %s1037_s10 = sld [smem:[#allocation6 + $0x301]] }
  0x43   : > { %v1487_v43 = vadd.f32 %v274_v34, %v271_v38  ;;  %v408_v44 = vadd.f32 %v407_v39, %v404_v36  ;;  %v415_v45 = vmul.f32 %v1462_v4, %v414_v42  ;;  %v753_v46 = vstv %s1048_s1  ;;  %s1038_s26 = sld [smem:[#allocation6 + $0x302]] }
  0x44   : > { %v754_v47 = vmul.f32 %v753_v46, %v1456_v0  ;;  %v756_v48 = vstv %s1049_s20  ;;  %s1039_s21 = sld [smem:[#allocation6 + $0x303]]  ;;  %v243_v34 = vshrl.u32 %v242_v33, 7 }
  0x45   : > { %277 = vrot.lane.b32.xlu0 %v1487_v43, %s1312_s22  ;;  %v412_v49 = vadd.f32 %v411_v41, %v408_v44  ;;  %v757_v50 = vmul.f32 %v1458_v1, %v756_v48  ;;  %v760_v51 = vstv %s1050_s29  ;;  %s1024_s27 = sld [smem:[#allocation6 + $0x280]] }
  0x46   : > { %v761_v52 = vmul.f32 %v1460_v2, %v760_v51  ;;  %v764_v53 = vstv %s1051_s6  ;;  %s1025_s30 = sld [smem:[#allocation6 + $0x281]] }
  0x47   : > { %v1495_v54 = vadd.f32 %v415_v45, %v412_v49  ;;  %v758_v55 = vadd.f32 %v757_v50, %v754_v47  ;;  %v765_v56 = vmul.f32 %v1462_v4, %v764_v53  ;;  %v683_v57 = vstv %s1036_s23  ;;  %s1026_s28 = sld [smem:[#allocation6 + $0x282]] }
  0x48   : > { %v684_v58 = vmul.f32 %v683_v57, %v1456_v0  ;;  %v686_v59 = vstv %s1037_s10  ;;  %s1027_s4 = sld [smem:[#allocation6 + $0x283]] }
  0x49   : > { %418 = vrot.lane.b32.xlu1 %v1495_v54, %s1312_s22  ;;  %v762_v60 = vadd.f32 %v761_v52, %v758_v55  ;;  %v687_v61 = vmul.f32 %v1458_v1, %v686_v59  ;;  %v690_v62 = vstv %s1038_s26  ;;  %s1012_s7 = sld [smem:[#allocation6 + $0x200]] }
  0x4a   : > { %v691_v63 = vmul.f32 %v1460_v2, %v690_v62  ;;  %v694_v3 = vstv %s1039_s21  ;;  %s1013_s8 = sld [smem:[#allocation6 + $0x201]]  ;;  %s959_s21 = sshll.u32 %s1440_s18, 6 }
  0x4b   : > { %v1503_v5 = vadd.f32 %v765_v56, %v762_v60  ;;  %v688_v6 = vadd.f32 %v687_v61, %v684_v58  ;;  %v695_v7 = vmul.f32 %v1462_v4, %v694_v3  ;;  %v613_v8 = vstv %s1024_s27  ;;  %s1014_s11 = sld [smem:[#allocation6 + $0x202]]  ;;  %s1665_s27 = scalar_lea.vmem [#allocation9], %s959_s21 }
  0x4c   : > { %v614_v9 = vmul.f32 %v613_v8, %v1456_v0  ;;  %v616_v10 = vstv %s1025_s30  ;;  %s1015_s19 = sld [smem:[#allocation6 + $0x203]]  ;;  %s1066_s30 = sshll.u32 %s1298_s15, 6 }
  0x4d   : > { %768 = vrot.lane.b32.xlu0 %v1503_v5, %s1312_s22  ;;  %v692_v11 = vadd.f32 %v691_v63, %v688_v6  ;;  %v617_v12 = vmul.f32 %v1458_v1, %v616_v10  ;;  %v620_v13 = vstv %s1026_s28  ;;  %s1004_s1 = sld [smem:[#allocation7 + $0x3]]  ;;  %s823_s15 = scalar_lea.sflag [#allocation4], %s1440_s18 }
  0x4e   : > { %v621_v14 = vmul.f32 %v1460_v2, %v620_v13  ;;  %v624_v15 = vstv %s1027_s4  ;;  %s281_s20 = sld [smem:[#allocation7]] }
  0x4f   : > { %v1511_v16 = vadd.f32 %v695_v7, %v692_v11  ;;  %v618_v17 = vadd.f32 %v617_v12, %v614_v9  ;;  %v625_v18 = vmul.f32 %v1462_v4, %v624_v15  ;;  %v543_v19 = vstv %s1012_s7  ;;  %s992_s29 = sld [smem:[#allocation7 + $0x2]]  ;;  %s835_s7 = scalar_lea.hbm %s1725_s3, %s1066_s30 }
  0x50   : > { %v544_v20 = vmul.f32 %v543_v19, %v1456_v0  ;;  %v546_v22 = vstv %s1013_s8  ;;  %s1028_s6 = sld [smem:[#allocation7 + $0x5]]  ;;  %s836_s8 = sshll.u32 %s1665_s27, 4  ;;  %s837_s8 = int_to_ptr.vmem [resolvable:$true] %s836_s8 }
  0x51   : > { %698 = vrot.lane.b32.xlu1 %v1511_v16, %s1312_s22  ;;  %v622_v23 = vadd.f32 %v621_v14, %v618_v17  ;;  %v547_v24 = vmul.f32 %v1458_v1, %v546_v22  ;;  %v550_v25 = vstv %s1014_s11  ;;  %v246_v1 = vand.u32 127, %v242_v33  ;;  %s1016_s23 = sld [smem:[#allocation7 + $0x4]]  ;;  %s838_s11 = sshll.u32 %s835_s7, 4  ;;  %s839_s11 = int_to_ptr.hbm [resolvable:$true] %s838_s11 }
  0x52   : > { %v551_v26 = vmul.f32 %v1460_v2, %v550_v25  ;;  %v554_v27 = vstv %s1015_s19  ;;  %v244_v2 = vadd.s32 8, %v243_v34  ;;  %s1052_s10 = sld [smem:[#allocation7 + $0x7]]  ;;  %s1230_s19 = sshra.s32 %s839_s11, 4  ;;  %s1231_s19 = int_to_ptr.hbm [resolvable:$true] %s1230_s19 }
  0x53   : > { %v1519_v28 = vadd.f32 %v625_v18, %v622_v23  ;;  %v548_v29 = vadd.f32 %v547_v24, %v544_v20  ;;  %v555_v0 = vmul.f32 %v1462_v4, %v554_v27  ;;  %v247_v35 = vmul.u32 2, %v246_v1  ;;  %s1040_s26 = sld [smem:[#allocation7 + $0x6]]  ;;  %p1237_p11 = scmp.lt.s32.totalorder %s1231_s19, %s1725_s3 }
  0x54   : > { %v1313_v4 = vmov 1.0   ;;  %v493_v48 = vstv %s1004_s1 }
  0x55   : > { %628 = vrot.lane.b32.xlu2 %v1519_v28, %s1312_s22  ;;  %v552_v30 = vadd.f32 %v551_v26, %v548_v29  ;;  %v254_v36 = vadd.s32 1, %v247_v35  ;;  %vm1528_vm0 = vcmp.eq.s32.totalorder %v244_v2, %v247_v35  ;;  %vm1542_vm2 = vcmp.eq.s32.totalorder %v243_v34, %v247_v35 }
  0x56   : > { %981 = vmatpush.msk.msra.mxu2 %vm1528_vm0, %v1313_v4  ;;  %970 = vmatpush.msk.msra.mxu0 %vm1528_vm0, %v1313_v4  ;;  %v423_v57 = vstv %s992_s29  ;;  %v633_v58 = vstv %s1028_s6  ;;  %s1236_s29 = scalar_lea.hbm %s1725_s3, 128 }
  0x57   : > { %v1524_v31 = vadd.f32 %v555_v0, %v552_v30  ;;  %vm1532_vm1 = vcmp.eq.s32.totalorder %v244_v2, %v254_v36  ;;  %vm1546_vm3 = vcmp.eq.s32.totalorder %v243_v34, %v254_v36  ;;  %v563_v62 = vstv %s1016_s23 }
  0x58   : > { %984 = vmatpush.msk.msra.mxu3 %vm1532_vm1, %v1313_v4  ;;  %973 = vmatpush.msk.msra.mxu1 %vm1532_vm1, %v1313_v4  ;;  %v773_v3 = vstv %s1052_s10 }
  0x59   : > { %982 = vmatpush.msk.msra.mxu2 %vm1542_vm2, %v1313_v4  ;;  %971 = vmatpush.msk.msra.mxu0 %vm1542_vm2, %v1313_v4  ;;  %v703_v9 = vstv %s1040_s26 }
  0x5a   : > { %985 = vmatpush.msk.msra.mxu3 %vm1546_vm3, %v1313_v4  ;;  %974 = vmatpush.msk.msra.mxu1 %vm1546_vm3, %v1313_v4 }
  0x5b   : > { %1005 = vmatpush.msk.msrb.mxu2 %vm1528_vm0, %v1313_v4  ;;  %993 = vmatpush.msk.msrb.mxu0 %vm1528_vm0, %v1313_v4 }
  0x5c   : > { %1008 = vmatpush.msk.msrb.mxu3 %vm1532_vm1, %v1313_v4  ;;  %996 = vmatpush.msk.msrb.mxu1 %vm1532_vm1, %v1313_v4 }
  0x5d   : > { %558 = vrot.lane.b32.xlu2 %v1524_v31, %s1312_s22  ;;  %1006 = vmatpush.msk.msrb.mxu2 %vm1542_vm2, %v1313_v4  ;;  %s980_s22 = sld [smem:[#allocation7 + $0x1]] }
  0x5e   : > { %1009 = vmatpush.msk.msrb.mxu3 %vm1546_vm3, %v1313_v4  ;;  %994 = vmatpush.msk.msrb.mxu0 %vm1542_vm2, %v1313_v4 }
  0x5f   : > { %997 = vmatpush.msk.msrb.mxu1 %vm1546_vm3, %v1313_v4 }
  0x63   : > { %v353_v41 = vstv %s980_s22  ;;  %s1232_s22 = scalar_lea.hbm %s1231_s19, 64 }
  0x64   : > { %p1233_p3 = scmp.ne.s32.totalorder %s1231_s19, %s1232_s22  ;;  %p1238_p12 = scmp.lt.s32.totalorder %s1236_s29, %s1232_s22 }
  0x66   : > { %p1234_p7 = pnand %p1233_p3, %p1388_p8  ;;  %p1239_p0 = por %p1238_p12, %p1237_p11 }
  0x68   : > { %p1235_p10 = pneg %p1234_p7 }
  0x6a   : > { %p1240_p1 = pnand %p1239_p0, %p1235_p10 }
  0xaf   : > { %v349_v42 = vpop.permute.xlu0 %348  ;;  %v629_v50 = vpop.permute.xlu2 %628 }
  0xb0   : > { %v351_v44 = vmax.f32 %v1471_v21, %v349_v42  ;;  %v282_v21 = vstv %s281_s20  ;;  %v631_v56 = vmax.f32 %v1519_v28, %v629_v50 }
  0xb2   : > { %v354_v45 = vadd.f32 %v353_v41, %v351_v44 }
  0xb3   : > { %v489_v46 = vpop.permute.xlu1 %488 }
  0xb4   : > { %983 = vmatmul.msk.f32.vlgmr.msra.gmra.mxu2 %vm284_vm4, %v354_v45  ;;  %986 = vmatmul.msk.f32.vlgmr.msra.gmra.mxu3 %vm284_vm4, %v354_v45  ;;  %v491_v47 = vmax.f32 %v1479_v32, %v489_v46 }
  0xb5   : > { %1029 = vmatpush.msk.msra.mxu2 %vm1528_vm0, %v1313_v4  ;;  %1032 = vmatpush.msk.msra.mxu3 %vm1532_vm1, %v1313_v4 }
  0xb6   : > { %v494_v51 = vadd.f32 %v493_v48, %v491_v47 }
  0xb7   : > { %v278_v49 = vpop.permute.xlu0 %277  ;;  %1030 = vmatpush.msk.msra.mxu2 %vm1542_vm2, %v1313_v4  ;;  %1033 = vmatpush.msk.msra.mxu3 %vm1546_vm3, %v1313_v4  ;;  %v559_v59 = vpop.permute.xlu2 %558 }
  0xb8   : > { %v280_v32 = vmax.f32 %v1487_v43, %v278_v49  ;;  %v561_v61 = vmax.f32 %v1524_v31, %v559_v59 }
  0xba   : > { %v283_v52 = vadd.f32 %v282_v21, %v280_v32  ;;  %v564_v6 = vadd.f32 %v563_v62, %v561_v61 }
  0xbb   : > { %v419_v53 = vpop.permute.xlu1 %418 }
  0xbc   : > { %972 = vmatmul.msk.f32.vlgmr.msra.gmra.mxu0 %vm284_vm4, %v283_v52  ;;  %975 = vmatmul.msk.f32.vlgmr.msra.gmra.mxu1 %vm284_vm4, %v283_v52  ;;  %v421_v55 = vmax.f32 %v1495_v54, %v419_v53  ;;  %v634_v54 = vadd.f32 %v633_v58, %v631_v56 }
  0xbd   : > { %1007 = vmatmul.msk.f32.vlgmr.msrb.gmra.mxu2 %vm284_vm4, %v494_v51  ;;  %1010 = vmatmul.msk.f32.vlgmr.msrb.gmra.mxu3 %vm284_vm4, %v494_v51 }
  0xbe   : > { %1017 = vmatpush.msk.msra.mxu0 %vm1528_vm0, %v1313_v4  ;;  %1020 = vmatpush.msk.msra.mxu1 %vm1532_vm1, %v1313_v4  ;;  %v424_v43 = vadd.f32 %v423_v57, %v421_v55 }
  0xbf   : > { %1053 = vmatpush.msk.msrb.mxu2 %vm1528_vm0, %v1313_v4  ;;  %1056 = vmatpush.msk.msrb.mxu3 %vm1532_vm1, %v1313_v4  ;;  %v769_v60 = vpop.permute.xlu0 %768 }
  0xc0   : > { %1018 = vmatpush.msk.msra.mxu0 %vm1542_vm2, %v1313_v4  ;;  %1021 = vmatpush.msk.msra.mxu1 %vm1546_vm3, %v1313_v4  ;;  %v771_v63 = vmax.f32 %v1503_v5, %v769_v60 }
  0xc1   : > { %1054 = vmatpush.msk.msrb.mxu2 %vm1542_vm2, %v1313_v4  ;;  %1057 = vmatpush.msk.msrb.mxu3 %vm1546_vm3, %v1313_v4 }
  0xc2   : > { %v774_v5 = vadd.f32 %v773_v3, %v771_v63 }
  0xc3   : > { %v699_v7 = vpop.permute.xlu1 %698 }
  0xc4   : > { %995 = vmatmul.msk.f32.vlgmr.msrb.gmra.mxu0 %vm284_vm4, %v424_v43  ;;  %998 = vmatmul.msk.f32.vlgmr.msrb.gmra.mxu1 %vm284_vm4, %v424_v43  ;;  %v701_v8 = vmax.f32 %v1511_v16, %v699_v7 }
  0xc5   : > { %1031 = vmatmul.msk.f32.vlgmr.msra.gmra.mxu2 %vm284_vm4, %v634_v54  ;;  %1034 = vmatmul.msk.f32.vlgmr.msra.gmra.mxu3 %vm284_vm4, %v634_v54 }
  0xc6   : > { %1041 = vmatpush.msk.msrb.mxu0 %vm1528_vm0, %v1313_v4  ;;  %1044 = vmatpush.msk.msrb.mxu1 %vm1532_vm1, %v1313_v4  ;;  %v704_v10 = vadd.f32 %v703_v9, %v701_v8 }
  0xc8   : > { %1042 = vmatpush.msk.msrb.mxu0 %vm1542_vm2, %v1313_v4  ;;  %1045 = vmatpush.msk.msrb.mxu1 %vm1546_vm3, %v1313_v4 }
  0xcc   : > { %1019 = vmatmul.msk.f32.vlgmr.msra.gmra.mxu0 %vm284_vm4, %v564_v6  ;;  %1022 = vmatmul.msk.f32.vlgmr.msra.gmra.mxu1 %vm284_vm4, %v564_v6 }
  0xcd   : > { %1055 = vmatmul.msk.f32.vlgmr.msrb.gmra.mxu2 %vm284_vm4, %v774_v5  ;;  %1058 = vmatmul.msk.f32.vlgmr.msrb.gmra.mxu3 %vm284_vm4, %v774_v5 }
  0xd4   : > { %1043 = vmatmul.msk.f32.vlgmr.msrb.gmra.mxu0 %vm284_vm4, %v704_v10  ;;  %1046 = vmatmul.msk.f32.vlgmr.msrb.gmra.mxu1 %vm284_vm4, %v704_v10 }
 0x137   : > { %v375_v11 = vpop.f32.mrf.mxu2  ;;  %v395_v12 = vpop.f32.mrf.mxu3 }
 0x138   : > { %v398_v13 = vmax.f32 %v375_v11, %v395_v12 }
 0x139   : > { %v305_v14 = vpop.f32.mrf.mxu0  ;;  %v325_v15 = vpop.f32.mrf.mxu1 }
 0x13a   : > { %v399_v17 = vmax.f32 %v398_v13, 0.0  ;;  %v328_v18 = vmax.f32 %v305_v14, %v325_v15 }
 0x13c   : > { %987 = vst.msk [vmem:[%s1665_s27 + $0x8] sm:$0xff] %vm330_vm5, %v399_v17  ;;  %v329_v16 = vmax.f32 %v328_v18, 0.0 }
 0x13e   : > { %331 = vst.msk [vmem:[%s1665_s27] sm:$0xff] %vm330_vm5, %v329_v16 }
 0x140   : > { %v515_v19 = vpop.f32.mrf.mxu2  ;;  %v535_v20 = vpop.f32.mrf.mxu3 }
 0x141   : > { %v538_v22 = vmax.f32 %v515_v19, %v535_v20  ;;  %v445_v23 = vpop.f32.mrf.mxu0  ;;  %v465_v24 = vpop.f32.mrf.mxu1 }
 0x142   : > { %v468_v25 = vmax.f32 %v445_v23, %v465_v24 }
 0x143   : > { %v539_v26 = vmax.f32 %v538_v22, 0.0 }
 0x144   : > { %v469_v27 = vmax.f32 %v468_v25, 0.0 }
 0x145   : > { %1011 = vst.msk [vmem:[%s1665_s27 + $0x18] sm:$0xff] %vm330_vm5, %v539_v26 }
 0x146   : > { %999 = vst.msk [vmem:[%s1665_s27 + $0x10] sm:$0xff] %vm330_vm5, %v469_v27 }
 0x148   : > { %v655_v28 = vpop.f32.mrf.mxu2  ;;  %v675_v29 = vpop.f32.mrf.mxu3 }
 0x149   : > { %v678_v30 = vmax.f32 %v655_v28, %v675_v29  ;;  %v585_v0 = vpop.f32.mrf.mxu0  ;;  %v605_v31 = vpop.f32.mrf.mxu1 }
 0x14a   : > { %v608_v33 = vmax.f32 %v585_v0, %v605_v31 }
 0x14b   : > { %v679_v1 = vmax.f32 %v678_v30, 0.0 }
 0x14c   : > { %v609_v34 = vmax.f32 %v608_v33, 0.0 }
 0x14d   : > { %1035 = vst.msk [vmem:[%s1665_s27 + $0x28] sm:$0xff] %vm330_vm5, %v679_v1 }
 0x14e   : > { %1023 = vst.msk [vmem:[%s1665_s27 + $0x20] sm:$0xff] %vm330_vm5, %v609_v34 }
 0x150   : > { %v795_v35 = vpop.f32.mrf.mxu2  ;;  %v815_v2 = vpop.f32.mrf.mxu3 }
 0x151   : > { %v725_v36 = vpop.f32.mrf.mxu0  ;;  %v745_v37 = vpop.f32.mrf.mxu1  ;;  %v818_v38 = vmax.f32 %v795_v35, %v815_v2 }
 0x152   : > { %v748_v4 = vmax.f32 %v725_v36, %v745_v37 }
 0x153   : > { %v819_v39 = vmax.f32 %v818_v38, 0.0 }
 0x154   : > { %v749_v40 = vmax.f32 %v748_v4, 0.0 }
 0x155   : > { %1059 = vst.msk [vmem:[%s1665_s27 + $0x38] sm:$0xff] %vm330_vm5, %v819_v39 }
 0x156   : > { %1047 = vst.msk [vmem:[%s1665_s27 + $0x30] sm:$0xff] %vm330_vm5, %v749_v40 }
 0x157   : > { %1243 = shalt.err (!%p1240_p1)
}
 0x158   : > { %s1314_s18 = smov 128   ;;  %s1315_s10 = smov 8  }
 0x159   : > { %1077 = dma.vmem_to_hbm [thread:$0]  (%p1388_p8), %s837_s8, 1024, %s839_s11, %s823_s15, %s1314_s18, %s1314_s18, %s1315_s10  }
 0x15a PF: > { %s853_s26 = sand.u32 1, %s1286_s12   ;;  %p1091_p2 = pnand %p951_p13, %p1392_p9 }
 0x15b   : > { %s854_s21 = scalar_lea.sflag [#allocation4], %s853_s26 }
 0x15c   : > { %p1092_p4 = pneg %p1091_p2 }
 0x15e   : > { %1281 = dma.done.wait (%p1092_p4), %s854_s21, 1024  }
 0x15f   : > { %1283 = vsyncadd (%p1092_p4), %s854_s21, 4294966272  ;;  %s21_s17 = sadd.s32 1, %s1306_s17   ;;  %s1743_s12 = smov %s1290_s13 }
 0x160   : > { %p18_p6 = scmp.ge.s32.totalorder %s21_s17, 4   ;;  %s1744_s13 = smov %s1294_s14 }
 0x161   : > { %s1745_s14 = smov %s1433_s5  ;;  %s1746_s15 = smov %s1302_s16 }
 0x162   : > { %s1747_s16 = smov %s1749_s9  ;;  %20 = sbr.rel (!%p18_p6) target bundleno = 10 (0xa), region = 96 }
 0x167   :  { %860 = vsyncpa [#allocation3], 1 }
 0x168   :  { %862 = vsyncpa [#allocation3 + $0x1], 1 }
 0x169   :  { %863 = vsyncpa [#allocation4], 1 }
 0x16a   :  { %865 = vsyncpa [#allocation4 + $0x1], 1 }
 0x16b   :  { %866 = vsyncpa [#allocation5], 1 }
 0x16c   :  { %868 = vsyncpa [#allocation5 + $0x1], 1 }
 0x16d   :  { %869 = vsyncpa [#allocation8], 1 }

</bundles_post_ra>
